<compile_context>
chip_gen: v6e
topology: v6e:2x2x1
jax: 0.10.0
libtpu: 0.0.40
codegen_flags: <defaults>
</compile_context>

<pallas_src>
import jax
import jax.numpy as jnp
from jax.experimental import pallas as pl
from jax.experimental.pallas import tpu as pltpu

MOMENTUM = 0.999
TEMP = 0.07
BN_EPS = 1e-5          # PyTorch BatchNorm1d default eps
NORM_EPS = 1e-12       # PyTorch F.normalize default eps


def _l2_normalize(x):
    # F.normalize(x, dim=1): x / max(||x||_2, eps) == x * rsqrt(max(ssq, eps^2))
    ssq = jnp.sum(x * x, axis=1, keepdims=True)
    return x * jax.lax.rsqrt(jnp.maximum(ssq, NORM_EPS * NORM_EPS))


def _bn_relu(z, gamma, beta):
    # BatchNorm1d (training mode): biased batch statistics over the rows of z.
    mu = jnp.mean(z, axis=0, keepdims=True)
    var = jnp.mean((z - mu) ** 2, axis=0, keepdims=True)
    zbn = (z - mu) * jax.lax.rsqrt(var + BN_EPS) * gamma + beta
    return jnp.maximum(zbn, 0.0)


def _cross_entropy(qv, kv):
    # CE(q @ k.T / temp, labels=arange(N)).
    # Diagonal (label) logits via a row-wise dot (no NxN iota/where); full
    # logits via a transposed-RHS MXU contraction (no wrapper / in-kernel
    # transpose of k); bf16 matmul inputs, f32 accumulation; max/exp/LSE f32.
    inv_t = 1.0 / TEMP
    logits = jax.lax.dot_general(
        qv.astype(jnp.bfloat16), kv.astype(jnp.bfloat16),
        dimension_numbers=(((1,), (1,)), ((), ())),
        preferred_element_type=jnp.float32) * inv_t
    diag = jnp.sum(qv * kv, axis=1, keepdims=True) * inv_t
    m = jnp.max(logits, axis=1, keepdims=True)
    lse = m + jnp.log(jnp.sum(jnp.exp(logits - m), axis=1, keepdims=True))
    return jnp.mean(lse - diag)


# --------------------------------------------------------------------------
# Fused kernel: encoder_q + predictor + L2 norm, momentum EMA + encoder_k +
# L2 norm, contrastive loss — one HBM read of the image tensor, one launch.
# --------------------------------------------------------------------------

def mocov3_fused_kernel(x_ref, qw_ref, qb_ref, kw_ref, kb_ref,
                        w1_ref, g_ref, be_ref, w2_ref, b2_ref,
                        loss_ref, kw_out_ref, kb_out_ref):
    bf16 = jnp.bfloat16
    f32 = jnp.float32
    nb = x_ref.shape[0] // 2     # per-view batch B; rows [:B]=view1, [B:]=view2

    # ---- shared stage: spatial mean over S, computed ONCE for both branches.
    # (The 1x1-conv encoder is linear over channels, so pool-then-matmul equals
    #  conv-then-pool; the pooled (2B, C) features feed both q and k encoders.)
    xm = jnp.mean(x_ref[...], axis=2)                        # (2B, C), f32 VPU
    xm_bf = xm.astype(bf16)

    # ---- query branch: encoder_q -> predictor -> L2 norm.  Both views as one
    #      (2B)-row batch (MXU M-occupancy); BN statistics per view half.
    h = jnp.dot(xm_bf, qw_ref[...].astype(bf16),
                preferred_element_type=f32) + qb_ref[...]
    # predictor Linear1 (bias omitted: cancelled exactly by the BN mean).
    z = jnp.dot(h.astype(bf16), w1_ref[...].astype(bf16),
                preferred_element_type=f32)
    g = g_ref[...]
    be = be_ref[...]
    a = jnp.concatenate([_bn_relu(z[:nb], g, be),
                         _bn_relu(z[nb:], g, be)], axis=0)   # (2B, D)
    p = jnp.dot(a.astype(bf16), w2_ref[...].astype(bf16),
                preferred_element_type=f32) + b2_ref[...]
    q = _l2_normalize(p)

    # ---- key branch (no_grad): momentum EMA of the key encoder (written back
    #      in place via input_output_aliases), then encoder_k + L2 norm.
    kw = kw_ref[...] * MOMENTUM + qw_ref[...] * (1.0 - MOMENTUM)
    kb = kb_ref[...] * MOMENTUM + qb_ref[...] * (1.0 - MOMENTUM)
    kw_out_ref[...] = kw
    kb_out_ref[...] = kb
    feat = jnp.dot(xm_bf, kw.astype(bf16),
                   preferred_element_type=f32) + kb
    k = _l2_normalize(feat)

    # ---- loss = ctr(q1, k2) + ctr(q2, k1), ctr = 2*temp * CE(logits/temp).
    loss = 2.0 * TEMP * (_cross_entropy(q[:nb], k[nb:])
                         + _cross_entropy(q[nb:], k[:nb]))
    loss_ref[0, 0] = loss


# --------------------------------------------------------------------------
# Wrapper
# --------------------------------------------------------------------------

def mocov3_forward(x1, x2, params):
    """x1, x2: (B, C, H, W) float32.  Returns (loss, updated key-encoder params)."""
    B, C, H, W = x1.shape
    D = params["enc_q_w"].shape[1]
    S = H * W
    f32 = jnp.float32

    # Both views batched: rows [0:B] = view 1, [B:2B] = view 2.
    x_cat = jnp.concatenate([x1.reshape(B, C, S), x2.reshape(B, C, S)], axis=0)

    vmem = pl.BlockSpec(memory_space=pltpu.MemorySpace.VMEM)
    smem = pl.BlockSpec(memory_space=pltpu.MemorySpace.SMEM)

    loss, new_kw, new_kb = pl.pallas_call(
        mocov3_fused_kernel,
        out_shape=(jax.ShapeDtypeStruct((1, 1), f32),    # loss
                   jax.ShapeDtypeStruct((C, D), f32),    # updated enc_k_w
                   jax.ShapeDtypeStruct((1, D), f32)),   # updated enc_k_b
        in_specs=[vmem] * 10,
        out_specs=(smem, vmem, vmem),
        input_output_aliases={3: 1, 4: 2},   # enc_k_w, enc_k_b updated in place
    )(x_cat,
      params["enc_q_w"], params["enc_q_b"],
      params["enc_k_w"], params["enc_k_b"],
      params["pred_w1"], params["bn_g"], params["bn_b"],
      params["pred_w2"], params["pred_b2"])

    return loss[0, 0], (new_kw, new_kb)


# --------------------------------------------------------------------------
# Deterministic parameter init + demo run
# --------------------------------------------------------------------------

def init_params(key, C, D):
    ks = jax.random.split(key, 6)
    f32 = jnp.float32
    enc_w = 0.1 * jax.random.normal(ks[0], (C, D), f32)      # 1x1 conv weight
    enc_b = 0.1 * jax.random.normal(ks[1], (1, D), f32)      # conv bias
    params = {
        "enc_q_w": enc_w, "enc_q_b": enc_b,
        # encoder_k is a deepcopy of encoder_q at construction.
        "enc_k_w": jnp.copy(enc_w), "enc_k_b": jnp.copy(enc_b),
        "pred_w1": 0.1 * jax.random.normal(ks[2], (D, D), f32),
        # pred_b1 exists in the PyTorch module but is mathematically cancelled
        # by the BatchNorm mean subtraction, so it is not passed to the kernel.
        "pred_b1": jnp.zeros((1, D), f32),
        "bn_g": jnp.ones((1, D), f32),
        "bn_b": jnp.zeros((1, D), f32),
        "pred_w2": 0.1 * jax.random.normal(ks[3], (D, D), f32),
        "pred_b2": jnp.zeros((1, D), f32),
    }
    return params, ks[4], ks[5]


if __name__ == "__main__":
    # Lane-dense feature dim (D = 128) and sublane-aligned batch (B = 8).
    B, C, H, W, D = 8, 4, 16, 16, 128
    params, kx1, kx2 = init_params(jax.random.PRNGKey(0), C, D)
    x1 = jax.random.normal(kx1, (B, C, H, W), jnp.float32)
    x2 = jax.random.normal(kx2, (B, C, H, W), jnp.float32)

    loss, (new_kw, new_kb) = jax.jit(mocov3_forward)(x1, x2, params)
    jax.block_until_ready(loss)
    assert loss.shape == () and jnp.isfinite(loss)
    assert new_kw.shape == (C, D) and new_kb.shape == (1, D)
    print("KERNEL_OK")
</pallas_src>

<mosaic_0001>
module attributes {stable_mosaic.version = 11 : i64} {
  func.func @mocov3_fused_kernel(%arg0: memref<16x4x256xf32, #tpu.memory_space<vmem>>, %arg1: memref<4x128xf32, #tpu.memory_space<vmem>>, %arg2: memref<1x128xf32, #tpu.memory_space<vmem>>, %arg3: memref<4x128xf32, #tpu.memory_space<vmem>>, %arg4: memref<1x128xf32, #tpu.memory_space<vmem>>, %arg5: memref<128x128xf32, #tpu.memory_space<vmem>>, %arg6: memref<1x128xf32, #tpu.memory_space<vmem>>, %arg7: memref<1x128xf32, #tpu.memory_space<vmem>>, %arg8: memref<128x128xf32, #tpu.memory_space<vmem>>, %arg9: memref<1x128xf32, #tpu.memory_space<vmem>>, %arg10: memref<1x1xf32, #tpu.memory_space<smem>>, %arg11: memref<4x128xf32, #tpu.memory_space<vmem>>, %arg12: memref<1x128xf32, #tpu.memory_space<vmem>>) attributes {dimension_semantics = [], scalar_prefetch = 0 : i64, scratch_operands = 0 : i64, tpu.core_type = #tpu.core_type<tc>} {
    %c0 = arith.constant 0 : index
    %c0_0 = arith.constant 0 : index
    %c0_1 = arith.constant 0 : index
    %0 = vector.load %arg0[%c0, %c0_0, %c0_1] : memref<16x4x256xf32, #tpu.memory_space<vmem>>, vector<16x4x256xf32>
    %cst = arith.constant dense<0.000000e+00> : vector<16x4xf32>
    %1 = vector.multi_reduction <add>, %0, %cst [2] : vector<16x4x256xf32> to vector<16x4xf32>
    %cst_2 = arith.constant 2.560000e+02 : f32
    %2 = vector.broadcast %cst_2 : f32 to vector<16x4xf32>
    %3 = arith.divf %1, %2 : vector<16x4xf32>
    %4 = arith.truncf %3 : vector<16x4xf32> to vector<16x4xbf16>
    %c0_3 = arith.constant 0 : index
    %c0_4 = arith.constant 0 : index
    %5 = vector.load %arg1[%c0_3, %c0_4] : memref<4x128xf32, #tpu.memory_space<vmem>>, vector<4x128xf32>
    %6 = arith.truncf %5 : vector<4x128xf32> to vector<4x128xbf16>
    %cst_5 = arith.constant dense<0.000000e+00> : vector<16x128xf32>
    %7 = tpu.matmul %4, %6, %cst_5 {dimension_numbers = #tpu.dot_dimension_numbers<[1], [0], [0], [1], [0, 0, 1, 1], [], []>} : vector<16x4xbf16>, vector<4x128xbf16>, vector<16x128xf32> -> vector<16x128xf32>
    %c0_6 = arith.constant 0 : index
    %c0_7 = arith.constant 0 : index
    %8 = vector.load %arg2[%c0_6, %c0_7] : memref<1x128xf32, #tpu.memory_space<vmem>>, vector<1x128xf32>
    %9 = vector.broadcast %8 : vector<1x128xf32> to vector<16x128xf32>
    %10 = arith.addf %7, %9 : vector<16x128xf32>
    %11 = arith.truncf %10 : vector<16x128xf32> to vector<16x128xbf16>
    %c0_8 = arith.constant 0 : index
    %c0_9 = arith.constant 0 : index
    %12 = vector.load %arg5[%c0_8, %c0_9] : memref<128x128xf32, #tpu.memory_space<vmem>>, vector<128x128xf32>
    %13 = arith.truncf %12 : vector<128x128xf32> to vector<128x128xbf16>
    %cst_10 = arith.constant dense<0.000000e+00> : vector<16x128xf32>
    %14 = tpu.matmul %11, %13, %cst_10 {dimension_numbers = #tpu.dot_dimension_numbers<[1], [0], [0], [1], [0, 0, 1, 1], [], []>} : vector<16x128xbf16>, vector<128x128xbf16>, vector<16x128xf32> -> vector<16x128xf32>
    %c0_11 = arith.constant 0 : index
    %c0_12 = arith.constant 0 : index
    %15 = vector.load %arg6[%c0_11, %c0_12] : memref<1x128xf32, #tpu.memory_space<vmem>>, vector<1x128xf32>
    %c0_13 = arith.constant 0 : index
    %c0_14 = arith.constant 0 : index
    %16 = vector.load %arg7[%c0_13, %c0_14] : memref<1x128xf32, #tpu.memory_space<vmem>>, vector<1x128xf32>
    %17 = vector.extract_strided_slice %14 {offsets = [0, 0], sizes = [8, 128], strides = [1, 1]} : vector<16x128xf32> to vector<8x128xf32>
    %cst_15 = arith.constant dense<0.000000e+00> : vector<128xf32>
    %18 = vector.multi_reduction <add>, %17, %cst_15 [0] : vector<8x128xf32> to vector<128xf32>
    %19 = vector.shape_cast %18 : vector<128xf32> to vector<1x128xf32>
    %cst_16 = arith.constant 8.000000e+00 : f32
    %20 = vector.broadcast %cst_16 : f32 to vector<1x128xf32>
    %21 = arith.divf %19, %20 : vector<1x128xf32>
    %22 = vector.broadcast %21 : vector<1x128xf32> to vector<8x128xf32>
    %23 = arith.subf %17, %22 : vector<8x128xf32>
    %24 = arith.mulf %23, %23 : vector<8x128xf32>
    %cst_17 = arith.constant dense<0.000000e+00> : vector<128xf32>
    %25 = vector.multi_reduction <add>, %24, %cst_17 [0] : vector<8x128xf32> to vector<128xf32>
    %26 = vector.shape_cast %25 : vector<128xf32> to vector<1x128xf32>
    %cst_18 = arith.constant 8.000000e+00 : f32
    %27 = vector.broadcast %cst_18 : f32 to vector<1x128xf32>
    %28 = arith.divf %26, %27 : vector<1x128xf32>
    %29 = vector.broadcast %21 : vector<1x128xf32> to vector<8x128xf32>
    %30 = arith.subf %17, %29 : vector<8x128xf32>
    %cst_19 = arith.constant 9.99999974E-6 : f32
    %31 = vector.broadcast %cst_19 : f32 to vector<1x128xf32>
    %32 = arith.addf %28, %31 : vector<1x128xf32>
    %33 = math.rsqrt %32 : vector<1x128xf32>
    %34 = vector.broadcast %33 : vector<1x128xf32> to vector<8x128xf32>
    %35 = arith.mulf %30, %34 : vector<8x128xf32>
    %36 = vector.broadcast %15 : vector<1x128xf32> to vector<8x128xf32>
    %37 = arith.mulf %35, %36 : vector<8x128xf32>
    %38 = vector.broadcast %16 : vector<1x128xf32> to vector<8x128xf32>
    %39 = arith.addf %37, %38 : vector<8x128xf32>
    %cst_20 = arith.constant 0.000000e+00 : f32
    %40 = vector.broadcast %cst_20 : f32 to vector<8x128xf32>
    %41 = arith.maximumf %39, %40 : vector<8x128xf32>
    %42 = vector.extract_strided_slice %14 {offsets = [8, 0], sizes = [8, 128], strides = [1, 1]} : vector<16x128xf32> to vector<8x128xf32>
    %cst_21 = arith.constant dense<0.000000e+00> : vector<128xf32>
    %43 = vector.multi_reduction <add>, %42, %cst_21 [0] : vector<8x128xf32> to vector<128xf32>
    %44 = vector.shape_cast %43 : vector<128xf32> to vector<1x128xf32>
    %cst_22 = arith.constant 8.000000e+00 : f32
    %45 = vector.broadcast %cst_22 : f32 to vector<1x128xf32>
    %46 = arith.divf %44, %45 : vector<1x128xf32>
    %47 = vector.broadcast %46 : vector<1x128xf32> to vector<8x128xf32>
    %48 = arith.subf %42, %47 : vector<8x128xf32>
    %49 = arith.mulf %48, %48 : vector<8x128xf32>
    %cst_23 = arith.constant dense<0.000000e+00> : vector<128xf32>
    %50 = vector.multi_reduction <add>, %49, %cst_23 [0] : vector<8x128xf32> to vector<128xf32>
    %51 = vector.shape_cast %50 : vector<128xf32> to vector<1x128xf32>
    %cst_24 = arith.constant 8.000000e+00 : f32
    %52 = vector.broadcast %cst_24 : f32 to vector<1x128xf32>
    %53 = arith.divf %51, %52 : vector<1x128xf32>
    %54 = vector.broadcast %46 : vector<1x128xf32> to vector<8x128xf32>
    %55 = arith.subf %42, %54 : vector<8x128xf32>
    %cst_25 = arith.constant 9.99999974E-6 : f32
    %56 = vector.broadcast %cst_25 : f32 to vector<1x128xf32>
    %57 = arith.addf %53, %56 : vector<1x128xf32>
    %58 = math.rsqrt %57 : vector<1x128xf32>
    %59 = vector.broadcast %58 : vector<1x128xf32> to vector<8x128xf32>
    %60 = arith.mulf %55, %59 : vector<8x128xf32>
    %61 = vector.broadcast %15 : vector<1x128xf32> to vector<8x128xf32>
    %62 = arith.mulf %60, %61 : vector<8x128xf32>
    %63 = vector.broadcast %16 : vector<1x128xf32> to vector<8x128xf32>
    %64 = arith.addf %62, %63 : vector<8x128xf32>
    %cst_26 = arith.constant 0.000000e+00 : f32
    %65 = vector.broadcast %cst_26 : f32 to vector<8x128xf32>
    %66 = arith.maximumf %64, %65 : vector<8x128xf32>
    %67 = tpu.concatenate %41, %66 in 0 : vector<8x128xf32>, vector<8x128xf32> -> vector<16x128xf32>
    %68 = arith.truncf %67 : vector<16x128xf32> to vector<16x128xbf16>
    %c0_27 = arith.constant 0 : index
    %c0_28 = arith.constant 0 : index
    %69 = vector.load %arg8[%c0_27, %c0_28] : memref<128x128xf32, #tpu.memory_space<vmem>>, vector<128x128xf32>
    %70 = arith.truncf %69 : vector<128x128xf32> to vector<128x128xbf16>
    %cst_29 = arith.constant dense<0.000000e+00> : vector<16x128xf32>
    %71 = tpu.matmul %68, %70, %cst_29 {dimension_numbers = #tpu.dot_dimension_numbers<[1], [0], [0], [1], [0, 0, 1, 1], [], []>} : vector<16x128xbf16>, vector<128x128xbf16>, vector<16x128xf32> -> vector<16x128xf32>
    %c0_30 = arith.constant 0 : index
    %c0_31 = arith.constant 0 : index
    %72 = vector.load %arg9[%c0_30, %c0_31] : memref<1x128xf32, #tpu.memory_space<vmem>>, vector<1x128xf32>
    %73 = vector.broadcast %72 : vector<1x128xf32> to vector<16x128xf32>
    %74 = arith.addf %71, %73 : vector<16x128xf32>
    %75 = arith.mulf %74, %74 : vector<16x128xf32>
    %cst_32 = arith.constant dense<0.000000e+00> : vector<16xf32>
    %76 = vector.multi_reduction <add>, %75, %cst_32 [1] : vector<16x128xf32> to vector<16xf32>
    %77 = vector.shape_cast %76 : vector<16xf32> to vector<16x1xf32>
    %cst_33 = arith.constant 1.000000e-24 : f32
    %78 = vector.broadcast %cst_33 : f32 to vector<16x1xf32>
    %79 = arith.maximumf %77, %78 : vector<16x1xf32>
    %80 = math.rsqrt %79 : vector<16x1xf32>
    %81 = vector.broadcast %80 : vector<16x1xf32> to vector<16x128xf32>
    %82 = arith.mulf %74, %81 : vector<16x128xf32>
    %c0_34 = arith.constant 0 : index
    %c0_35 = arith.constant 0 : index
    %83 = vector.load %arg3[%c0_34, %c0_35] : memref<4x128xf32, #tpu.memory_space<vmem>>, vector<4x128xf32>
    %cst_36 = arith.constant 9.990000e-01 : f32
    %84 = vector.broadcast %cst_36 : f32 to vector<4x128xf32>
    %85 = arith.mulf %83, %84 : vector<4x128xf32>
    %c0_37 = arith.constant 0 : index
    %c0_38 = arith.constant 0 : index
    %86 = vector.load %arg1[%c0_37, %c0_38] : memref<4x128xf32, #tpu.memory_space<vmem>>, vector<4x128xf32>
    %cst_39 = arith.constant 1.000000e-03 : f32
    %87 = vector.broadcast %cst_39 : f32 to vector<4x128xf32>
    %88 = arith.mulf %86, %87 : vector<4x128xf32>
    %89 = arith.addf %85, %88 : vector<4x128xf32>
    %c0_40 = arith.constant 0 : index
    %c0_41 = arith.constant 0 : index
    %90 = vector.load %arg4[%c0_40, %c0_41] : memref<1x128xf32, #tpu.memory_space<vmem>>, vector<1x128xf32>
    %cst_42 = arith.constant 9.990000e-01 : f32
    %91 = vector.broadcast %cst_42 : f32 to vector<1x128xf32>
    %92 = arith.mulf %90, %91 : vector<1x128xf32>
    %c0_43 = arith.constant 0 : index
    %c0_44 = arith.constant 0 : index
    %93 = vector.load %arg2[%c0_43, %c0_44] : memref<1x128xf32, #tpu.memory_space<vmem>>, vector<1x128xf32>
    %cst_45 = arith.constant 1.000000e-03 : f32
    %94 = vector.broadcast %cst_45 : f32 to vector<1x128xf32>
    %95 = arith.mulf %93, %94 : vector<1x128xf32>
    %96 = arith.addf %92, %95 : vector<1x128xf32>
    %c0_46 = arith.constant 0 : index
    %c0_47 = arith.constant 0 : index
    %97 = vector.load %arg11[%c0_46, %c0_47] : memref<4x128xf32, #tpu.memory_space<vmem>>, vector<4x128xf32>
    tpu.vector_store %arg11[%c0_46, %c0_47], %89 {strides = array<i32>} : memref<4x128xf32, #tpu.memory_space<vmem>>, vector<4x128xf32>,
    %c0_48 = arith.constant 0 : index
    %c0_49 = arith.constant 0 : index
    %98 = vector.load %arg12[%c0_48, %c0_49] : memref<1x128xf32, #tpu.memory_space<vmem>>, vector<1x128xf32>
    tpu.vector_store %arg12[%c0_48, %c0_49], %96 {strides = array<i32>} : memref<1x128xf32, #tpu.memory_space<vmem>>, vector<1x128xf32>,
    %99 = arith.truncf %89 : vector<4x128xf32> to vector<4x128xbf16>
    %cst_50 = arith.constant dense<0.000000e+00> : vector<16x128xf32>
    %100 = tpu.matmul %4, %99, %cst_50 {dimension_numbers = #tpu.dot_dimension_numbers<[1], [0], [0], [1], [0, 0, 1, 1], [], []>} : vector<16x4xbf16>, vector<4x128xbf16>, vector<16x128xf32> -> vector<16x128xf32>
    %101 = vector.broadcast %96 : vector<1x128xf32> to vector<16x128xf32>
    %102 = arith.addf %100, %101 : vector<16x128xf32>
    %103 = arith.mulf %102, %102 : vector<16x128xf32>
    %cst_51 = arith.constant dense<0.000000e+00> : vector<16xf32>
    %104 = vector.multi_reduction <add>, %103, %cst_51 [1] : vector<16x128xf32> to vector<16xf32>
    %105 = vector.shape_cast %104 : vector<16xf32> to vector<16x1xf32>
    %cst_52 = arith.constant 1.000000e-24 : f32
    %106 = vector.broadcast %cst_52 : f32 to vector<16x1xf32>
    %107 = arith.maximumf %105, %106 : vector<16x1xf32>
    %108 = math.rsqrt %107 : vector<16x1xf32>
    %109 = vector.broadcast %108 : vector<16x1xf32> to vector<16x128xf32>
    %110 = arith.mulf %102, %109 : vector<16x128xf32>
    %111 = vector.extract_strided_slice %82 {offsets = [0, 0], sizes = [8, 128], strides = [1, 1]} : vector<16x128xf32> to vector<8x128xf32>
    %112 = vector.extract_strided_slice %110 {offsets = [8, 0], sizes = [8, 128], strides = [1, 1]} : vector<16x128xf32> to vector<8x128xf32>
    %113 = arith.truncf %111 : vector<8x128xf32> to vector<8x128xbf16>
    %114 = arith.truncf %112 : vector<8x128xf32> to vector<8x128xbf16>
    %cst_53 = arith.constant dense<0.000000e+00> : vector<8x8xf32>
    %115 = tpu.matmul %113, %114, %cst_53 {dimension_numbers = #tpu.dot_dimension_numbers<[1], [1], [0], [0], [0, 0, 1, 0], [], []>} : vector<8x128xbf16>, vector<8x128xbf16>, vector<8x8xf32> -> vector<8x8xf32>
    %cst_54 = arith.constant 14.2857141 : f32
    %116 = vector.broadcast %cst_54 : f32 to vector<8x8xf32>
    %117 = arith.mulf %115, %116 : vector<8x8xf32>
    %118 = arith.mulf %111, %112 : vector<8x128xf32>
    %cst_55 = arith.constant dense<0.000000e+00> : vector<8xf32>
    %119 = vector.multi_reduction <add>, %118, %cst_55 [1] : vector<8x128xf32> to vector<8xf32>
    %120 = vector.shape_cast %119 : vector<8xf32> to vector<8x1xf32>
    %cst_56 = arith.constant 14.2857141 : f32
    %121 = vector.broadcast %cst_56 : f32 to vector<8x1xf32>
    %122 = arith.mulf %120, %121 : vector<8x1xf32>
    %cst_57 = arith.constant dense<0xFF800000> : vector<8xf32>
    %123 = vector.multi_reduction <maximumf>, %117, %cst_57 [1] : vector<8x8xf32> to vector<8xf32>
    %124 = vector.shape_cast %123 : vector<8xf32> to vector<8x1xf32>
    %125 = vector.broadcast %124 : vector<8x1xf32> to vector<8x8xf32>
    %126 = arith.subf %117, %125 : vector<8x8xf32>
    %127 = math.exp %126 : vector<8x8xf32>
    %cst_58 = arith.constant dense<0.000000e+00> : vector<8xf32>
    %128 = vector.multi_reduction <add>, %127, %cst_58 [1] : vector<8x8xf32> to vector<8xf32>
    %129 = vector.shape_cast %128 : vector<8xf32> to vector<8x1xf32>
    %130 = math.log %129 : vector<8x1xf32>
    %131 = arith.addf %124, %130 : vector<8x1xf32>
    %132 = arith.subf %131, %122 : vector<8x1xf32>
    %133 = vector.shape_cast %132 : vector<8x1xf32> to vector<1x8x1xf32>
    %cst_59 = arith.constant dense<0.000000e+00> : vector<1xf32>
    %134 = vector.multi_reduction <add>, %133, %cst_59 [1, 2] : vector<1x8x1xf32> to vector<1xf32>
    %135 = vector.shape_cast %134 : vector<1xf32> to vector<1x1x1xf32>
    %136 = vector.extract %135[0, 0, 0] : f32 from vector<1x1x1xf32>
    %cst_60 = arith.constant 8.000000e+00 : f32
    %137 = arith.divf %136, %cst_60 : f32
    %138 = vector.extract_strided_slice %82 {offsets = [8, 0], sizes = [8, 128], strides = [1, 1]} : vector<16x128xf32> to vector<8x128xf32>
    %139 = vector.extract_strided_slice %110 {offsets = [0, 0], sizes = [8, 128], strides = [1, 1]} : vector<16x128xf32> to vector<8x128xf32>
    %140 = arith.truncf %138 : vector<8x128xf32> to vector<8x128xbf16>
    %141 = arith.truncf %139 : vector<8x128xf32> to vector<8x128xbf16>
    %cst_61 = arith.constant dense<0.000000e+00> : vector<8x8xf32>
    %142 = tpu.matmul %140, %141, %cst_61 {dimension_numbers = #tpu.dot_dimension_numbers<[1], [1], [0], [0], [0, 0, 1, 0], [], []>} : vector<8x128xbf16>, vector<8x128xbf16>, vector<8x8xf32> -> vector<8x8xf32>
    %cst_62 = arith.constant 14.2857141 : f32
    %143 = vector.broadcast %cst_62 : f32 to vector<8x8xf32>
    %144 = arith.mulf %142, %143 : vector<8x8xf32>
    %145 = arith.mulf %138, %139 : vector<8x128xf32>
    %cst_63 = arith.constant dense<0.000000e+00> : vector<8xf32>
    %146 = vector.multi_reduction <add>, %145, %cst_63 [1] : vector<8x128xf32> to vector<8xf32>
    %147 = vector.shape_cast %146 : vector<8xf32> to vector<8x1xf32>
    %cst_64 = arith.constant 14.2857141 : f32
    %148 = vector.broadcast %cst_64 : f32 to vector<8x1xf32>
    %149 = arith.mulf %147, %148 : vector<8x1xf32>
    %cst_65 = arith.constant dense<0xFF800000> : vector<8xf32>
    %150 = vector.multi_reduction <maximumf>, %144, %cst_65 [1] : vector<8x8xf32> to vector<8xf32>
    %151 = vector.shape_cast %150 : vector<8xf32> to vector<8x1xf32>
    %152 = vector.broadcast %151 : vector<8x1xf32> to vector<8x8xf32>
    %153 = arith.subf %144, %152 : vector<8x8xf32>
    %154 = math.exp %153 : vector<8x8xf32>
    %cst_66 = arith.constant dense<0.000000e+00> : vector<8xf32>
    %155 = vector.multi_reduction <add>, %154, %cst_66 [1] : vector<8x8xf32> to vector<8xf32>
    %156 = vector.shape_cast %155 : vector<8xf32> to vector<8x1xf32>
    %157 = math.log %156 : vector<8x1xf32>
    %158 = arith.addf %151, %157 : vector<8x1xf32>
    %159 = arith.subf %158, %149 : vector<8x1xf32>
    %160 = vector.shape_cast %159 : vector<8x1xf32> to vector<1x8x1xf32>
    %cst_67 = arith.constant dense<0.000000e+00> : vector<1xf32>
    %161 = vector.multi_reduction <add>, %160, %cst_67 [1, 2] : vector<1x8x1xf32> to vector<1xf32>
    %162 = vector.shape_cast %161 : vector<1xf32> to vector<1x1x1xf32>
    %163 = vector.extract %162[0, 0, 0] : f32 from vector<1x1x1xf32>
    %cst_68 = arith.constant 8.000000e+00 : f32
    %164 = arith.divf %163, %cst_68 : f32
    %165 = arith.addf %137, %164 : f32
    %cst_69 = arith.constant 1.400000e-01 : f32
    %166 = arith.mulf %cst_69, %165 : f32
    %c0_70 = arith.constant 0 : index
    %c0_71 = arith.constant 0 : index
    %167 = memref.load %arg10[%c0_70, %c0_71] : memref<1x1xf32, #tpu.memory_space<smem>>
    memref.store %166, %arg10[%c0_70, %c0_71] : memref<1x1xf32, #tpu.memory_space<smem>>
    return
  }
}

</mosaic_0001>

<bundles_post_ra>
// kernel: mocov3_forward.1
= control target key start
LH: loop header
LB: loop body
LE: loop exit
PB: predicated region body
PF: predicated region fallthrough
CT: control target
= control target key end

     0   :  { %vm104_vm0 = vcmask 1043456   ;;  %s1360_s0 = inlined_call_operand.vmem [shape: f32[16,4,256], index: 0, kind: input, shape index: {}]   ;;  %s1361_s1 = inlined_call_operand.vmem [shape: f32[4,128], index: 1, kind: input, shape index: {}]   ;;  %s1362_s2 = inlined_call_operand.vmem [shape: f32[1,128], index: 2, kind: input, shape index: {}]   ;;  %s1363_s3 = inlined_call_operand.vmem [shape: f32[4,128], index: 3, kind: input, shape index: {}, may-alias: {3,11}]   ;;  %s1364_s4 = inlined_call_operand.vmem [shape: f32[1,128], index: 4, kind: input, shape index: {}, may-alias: {4,12}]   ;;  %s1365_s5 = inlined_call_operand.vmem [shape: f32[128,128], index: 5, kind: input, shape index: {}]   ;;  %s1366_s6 = inlined_call_operand.vmem [shape: f32[1,128], index: 6, kind: input, shape index: {}]   ;;  %s1367_s7 = inlined_call_operand.vmem [shape: f32[1,128], index: 7, kind: input, shape index: {}]   ;;  %s1368_s8 = inlined_call_operand.vmem [shape: f32[128,128], index: 8, kind: input, shape index: {}]   ;;  %s1369_s9 = inlined_call_operand.vmem [shape: f32[1,128], index: 9, kind: input, shape index: {}]   ;;  %s1370_s10 = inlined_call_operand.hbm [shape: f32[1,1], index: 10, kind: output, shape index: {0}]   ;;  %s1371_s11 = inlined_call_operand.vmem [shape: f32[4,128], index: 11, kind: output, shape index: {1}, may-alias: {3,11}]   ;;  %s1372_s12 = inlined_call_operand.vmem [shape: f32[1,128], index: 12, kind: output, shape index: {2}, may-alias: {4,12}]  }
   0x1   :  { %v48_v0 = vld [vmem:[%s1360_s0 + $0x40] sm:$0xff]  ;;  %v49_v2 = vld [vmem:[%s1360_s0 + $0x48] sm:$0xff]  ;;  %v50_v8 = vld [vmem:[%s1360_s0 + $0x50] sm:$0xff] }
   0x2   :  { %v40_v1 = vld [vmem:[%s1360_s0] sm:$0xff]  ;;  %v80_v3 = vcombine.high %v48_v0, %v48_v0  ;;  %v145_v4 = vsel %vm104_vm0, %v48_v0, 0.0  ;;  %v41_v7 = vld [vmem:[%s1360_s0 + $0x8] sm:$0xff]  ;;  %v81_v9 = vcombine.high %v49_v2, %v49_v2  ;;  %v150_v10 = vsel %vm104_vm0, %v49_v2, 0.0  ;;  %v42_v12 = vld [vmem:[%s1360_s0 + $0x10] sm:$0xff] }
   0x3   :  { %v72_v5 = vcombine.high %v40_v1, %v40_v1  ;;  %v105_v6 = vsel %vm104_vm0, %v40_v1, 0.0  ;;  %v73_v11 = vcombine.high %v41_v7, %v41_v7  ;;  %v110_v15 = vsel %vm104_vm0, %v41_v7, 0.0  ;;  %v51_v21 = vld [vmem:[%s1360_s0 + $0x58] sm:$0xff] }
   0x4   :  { %v146_v13 = vsel %vm104_vm0, %v80_v3, 0.0  ;;  %v82_v16 = vcombine.high %v50_v8, %v50_v8  ;;  %v151_v19 = vsel %vm104_vm0, %v81_v9, 0.0  ;;  %v43_v22 = vld [vmem:[%s1360_s0 + $0x18] sm:$0xff]  ;;  %v74_v23 = vcombine.high %v42_v12, %v42_v12 }
   0x5   :  { %v106_v14 = vsel %vm104_vm0, %v72_v5, 0.0  ;;  %v147_v17 = vadd.f32 %v146_v13, %v145_v4  ;;  %v111_v20 = vsel %vm104_vm0, %v73_v11, 0.0 }
   0x6   :  { %v107_v18 = vadd.f32 %v106_v14, %v105_v6 }
   0x7   :  { %18 = vsyncpa [#allocation3], 0  ;;  %148 = vadd.xlane.f32.xlu1 %v147_v17  ;;  %v152_v24 = vadd.f32 %v151_v19, %v150_v10  ;;  %v112_v25 = vadd.f32 %v111_v20, %v110_v15  ;;  %v155_v26 = vsel %vm104_vm0, %v50_v8, 0.0  ;;  %v156_v27 = vsel %vm104_vm0, %v82_v16, 0.0  ;;  %v52_v32 = vld [vmem:[%s1360_s0 + $0x60] sm:$0xff]  ;;  %v53_v42 = vld [vmem:[%s1360_s0 + $0x68] sm:$0xff] }
   0x8   :  { %108 = vadd.xlane.f32.xlu0 %v107_v18  ;;  %v115_v28 = vsel %vm104_vm0, %v42_v12, 0.0  ;;  %v116_v29 = vsel %vm104_vm0, %v74_v23, 0.0  ;;  %v83_v30 = vcombine.high %v51_v21, %v51_v21  ;;  %v75_v31 = vcombine.high %v43_v22, %v43_v22  ;;  %v44_v33 = vld [vmem:[%s1360_s0 + $0x20] sm:$0xff]  ;;  %v45_v43 = vld [vmem:[%s1360_s0 + $0x28] sm:$0xff]  ;;  %v54_v52 = vld [vmem:[%s1360_s0 + $0x70] sm:$0xff]  ;;  %s1002_s24 = smov [#allocation2]  }
   0x9   :  { %v157_v34 = vadd.f32 %v156_v27, %v155_v26  ;;  %v117_v35 = vadd.f32 %v116_v29, %v115_v28  ;;  %v160_v36 = vsel %vm104_vm0, %v51_v21, 0.0  ;;  %v84_v37 = vcombine.high %v52_v32, %v52_v32  ;;  %v46_v53 = vld [vmem:[%s1360_s0 + $0x30] sm:$0xff]  ;;  %v55_v62 = vld [vmem:[%s1360_s0 + $0x78] sm:$0xff]  ;;  %v218_v16 = vld [vmem:[%s1361_s1] sm:$0xf] }
   0xa   :  { %v161_v38 = vsel %vm104_vm0, %v83_v30, 0.0  ;;  %v120_v39 = vsel %vm104_vm0, %v43_v22, 0.0  ;;  %v121_v40 = vsel %vm104_vm0, %v75_v31, 0.0  ;;  %v76_v41 = vcombine.high %v44_v33, %v44_v33  ;;  %v47_v63 = vld [vmem:[%s1360_s0 + $0x38] sm:$0xff]  ;;  %v606_v20 = vld [vmem:[%s1363_s3] sm:$0xf] }
   0xb   :  { %153 = vadd.xlane.f32.xlu1 %v152_v24  ;;  %v162_v44 = vadd.f32 %v161_v38, %v160_v36  ;;  %v122_v45 = vadd.f32 %v121_v40, %v120_v39  ;;  %v165_v46 = vsel %vm104_vm0, %v52_v32, 0.0  ;;  %v166_v47 = vsel %vm104_vm0, %v84_v37, 0.0  ;;  %v411_v24 = vld [vmem:[%s1365_s5 + $0x70] sm:$0xff]  ;;  %v409_v26 = vld [vmem:[%s1365_s5 + $0x60] sm:$0xff]  ;;  %v410_v28 = vld [vmem:[%s1365_s5 + $0x68] sm:$0xff] }
   0xc   :  { %113 = vadd.xlane.f32.xlu0 %v112_v25  ;;  %v125_v48 = vsel %vm104_vm0, %v44_v33, 0.0  ;;  %v126_v49 = vsel %vm104_vm0, %v76_v41, 0.0  ;;  %v85_v50 = vcombine.high %v53_v42, %v53_v42  ;;  %v77_v51 = vcombine.high %v45_v43, %v45_v43  ;;  %v412_v25 = vld [vmem:[%s1365_s5 + $0x78] sm:$0xff]  ;;  %v407_v32 = vld [vmem:[%s1365_s5 + $0x50] sm:$0xff]  ;;  %v406_v36 = vld [vmem:[%s1365_s5 + $0x48] sm:$0xff] }
   0xd   :  { %v167_v54 = vadd.f32 %v166_v47, %v165_v46  ;;  %v127_v55 = vadd.f32 %v126_v49, %v125_v48  ;;  %v170_v56 = vsel %vm104_vm0, %v53_v42, 0.0  ;;  %v130_v57 = vsel %vm104_vm0, %v45_v43, 0.0  ;;  %v408_v33 = vld [vmem:[%s1365_s5 + $0x58] sm:$0xff]  ;;  %v403_v38 = vld [vmem:[%s1365_s5 + $0x30] sm:$0xff]  ;;  %v401_v41 = vld [vmem:[%s1365_s5 + $0x20] sm:$0xff] }
   0xe   :  { %v171_v58 = vsel %vm104_vm0, %v85_v50, 0.0  ;;  %v131_v59 = vsel %vm104_vm0, %v77_v51, 0.0  ;;  %v86_v60 = vcombine.high %v54_v52, %v54_v52  ;;  %v78_v61 = vcombine.high %v46_v53, %v46_v53  ;;  %v404_v39 = vld [vmem:[%s1365_s5 + $0x38] sm:$0xff]  ;;  %v402_v42 = vld [vmem:[%s1365_s5 + $0x28] sm:$0xff] }
   0xf   :  { %158 = vadd.xlane.f32.xlu1 %v157_v34  ;;  %v172_v0 = vadd.f32 %v171_v58, %v170_v56  ;;  %v132_v1 = vadd.f32 %v131_v59, %v130_v57  ;;  %v175_v2 = vsel %vm104_vm0, %v54_v52, 0.0  ;;  %v135_v3 = vsel %vm104_vm0, %v46_v53, 0.0 }
  0x10   :  { %118 = vadd.xlane.f32.xlu0 %v117_v35  ;;  %v176_v4 = vsel %vm104_vm0, %v86_v60, 0.0  ;;  %v136_v5 = vsel %vm104_vm0, %v78_v61, 0.0  ;;  %v87_v6 = vcombine.high %v55_v62, %v55_v62  ;;  %v79_v7 = vcombine.high %v47_v63, %v47_v63  ;;  %v405_v35 = vld [vmem:[%s1365_s5 + $0x40] sm:$0xff] }
  0x11   :  { %v177_v8 = vadd.f32 %v176_v4, %v175_v2  ;;  %v137_v9 = vadd.f32 %v136_v5, %v135_v3  ;;  %v180_v10 = vsel %vm104_vm0, %v55_v62, 0.0  ;;  %v140_v12 = vsel %vm104_vm0, %v47_v63, 0.0 }
  0x12   :  { %v181_v11 = vsel %vm104_vm0, %v87_v6, 0.0  ;;  %v141_v13 = vsel %vm104_vm0, %v79_v7, 0.0  ;;  %v219_v17 = vpack.c.bf16 %v218_v16, %v218_v16  ;;  %vm351_vm1 = vcmask 1041408  }
  0x13   :  { %163 = vadd.xlane.f32.xlu1 %v162_v44  ;;  %v182_v14 = vadd.f32 %v181_v11, %v180_v10  ;;  %v142_v15 = vadd.f32 %v141_v13, %v140_v12  ;;  %v1000_v18 = vmov 0.0   ;;  %v608_v21 = vmul.f32 0.001, %v218_v16 }
  0x14   :  { %123 = vadd.xlane.f32.xlu0 %v122_v45  ;;  %883 = vmatprep.subr.bf16.mxu0 %v1000_v18  ;;  %v353_v19 = vsel %vm351_vm1, %v219_v17, 0  ;;  %v607_v22 = vmul.f32 0.999, %v606_v20  ;;  %vm1001_vm2 = vmmov 0   ;;  %v420_v27 = vpack.c.bf16 %v412_v25, %v411_v24 }
  0x15   :  { %889 = vmatprep.subr.bf16.mxu1 %v1000_v18  ;;  %884 = vmatpush3.bf16.msra.mxu0 %v353_v19  ;;  %v419_v30 = vpack.c.bf16 %v410_v28, %v409_v26  ;;  %v418_v34 = vpack.c.bf16 %v408_v33, %v407_v32  ;;  %v417_v37 = vpack.c.bf16 %v406_v36, %v405_v35  ;;  %v222_v50 = vlaneseq }
  0x16   :  { %885 = vmatprep.mubr.msk.bf16.mxu0 %vm1001_vm2, %v1000_v18  ;;  %905 = vmatprep.mubr.msk.bf16.mxu1 %vm1001_vm2, %v1000_v18  ;;  %v609_v23 = vadd.f32 %v608_v21, %v607_v22  ;;  %v416_v40 = vpack.c.bf16 %v404_v39, %v403_v38  ;;  %v415_v43 = vpack.c.bf16 %v402_v42, %v401_v41  ;;  %vm325_vm3 = vcmask 1041409  }
  0x17   :  { %168 = vadd.xlane.f32.xlu1 %v167_v54  ;;  %909 = vmatprep.subr.bf16.mxu0 %v1000_v18  ;;  %v1210_v57 = vshrl.u32 %v222_v50, 7  ;;  %v260_v58 = vand.u32 127, %v222_v50  ;;  %vm327_vm4 = vcmask 1042434   ;;  %vm329_vm5 = vcmask 1043459  }
  0x18   :  { %128 = vadd.xlane.f32.xlu0 %v127_v55  ;;  %614 = vst [vmem:[%s1371_s11] sm:$0xf] %v609_v23  ;;  %v616_v29 = vpack.c.bf16 %v609_v23, %v609_v23  ;;  %890 = vmatpush3.bf16.msra.mxu1 %v420_v27  ;;  %vm331_vm6 = vcmask 1044484   ;;  %vm333_vm7 = vcmask 1045509   ;;  %vm335_vm8 = vcmask 1046534  }
  0x19   :  { %891 = vmatprep.subr.bf16.mxu1 %v1000_v18  ;;  %v1213_v7 = vsub.s32 %v260_v58, %v1210_v57  ;;  %vm337_vm9 = vcmask 1047559   ;;  %vm347_vm10 = vcmask 31744   ;;  %vm726_vm11 = vcmask 64512  }
  0x1a   :  { %v1178_v31 = vsel %vm351_vm1, %v616_v29, 0  ;;  %vm740_vm12 = vcmask 7168  }
  0x1b   :  { %173 = vadd.xlane.f32.xlu1 %v172_v0 }
  0x1c   :  { %133 = vadd.xlane.f32.xlu0 %v132_v1  ;;  %892 = vmatpush3.bf16.msra.mxu1 %v419_v30 }
  0x1d   :  { %893 = vmatprep.subr.bf16.mxu1 %v1000_v18 }
  0x1f   :  { %178 = vadd.xlane.f32.xlu1 %v177_v8 }
  0x20   :  { %138 = vadd.xlane.f32.xlu0 %v137_v9  ;;  %894 = vmatpush3.bf16.msra.mxu1 %v418_v34 }
  0x21   :  { %895 = vmatprep.subr.bf16.mxu1 %v1000_v18 }
  0x23   :  { %183 = vadd.xlane.f32.xlu1 %v182_v14 }
  0x24   :  { %143 = vadd.xlane.f32.xlu0 %v142_v15  ;;  %896 = vmatpush3.bf16.msra.mxu1 %v417_v37 }
  0x25   :  { %897 = vmatprep.subr.bf16.mxu1 %v1000_v18 }
  0x28   :  { %898 = vmatpush3.bf16.msra.mxu1 %v416_v40 }
  0x29   :  { %899 = vmatprep.subr.bf16.mxu1 %v1000_v18 }
  0x2c   :  { %900 = vmatpush3.bf16.msra.mxu1 %v415_v43 }
  0x2d   :  { %901 = vmatprep.subr.bf16.mxu1 %v1000_v18 }
  0x90   :  { %v149_v44 = vpop.xlane.xlu1 %148 }
  0x91   :  { %v109_v45 = vpop.xlane.xlu0 %108  ;;  %v194_v53 = vmul.f32 0.00390625, %v149_v44 }
  0x92   :  { %v186_v54 = vmul.f32 0.00390625, %v109_v45 }
  0x93   :  { %v210_v61 = vpack.c.bf16 %v194_v53, %v194_v53 }
  0x94   :  { %v154_v46 = vpop.xlane.xlu1 %153  ;;  %v202_v62 = vpack.c.bf16 %v186_v54, %v186_v54 }
  0x95   :  { %v114_v47 = vpop.xlane.xlu0 %113  ;;  %v195_v51 = vmul.f32 0.00390625, %v154_v46  ;;  %v251_v10 = vunpack.c.l.b16 %v210_v61 }
  0x96   :  { %v187_v52 = vmul.f32 0.00390625, %v114_v47  ;;  %v243_v11 = vunpack.c.l.b16 %v202_v62 }
  0x97   :  { %v211_v59 = vpack.c.bf16 %v195_v51, %v195_v51  ;;  %v296_v32 = vrot.slane %v251_v10, %v1213_v7 }
  0x98   :  { %v159_v48 = vpop.xlane.xlu1 %158  ;;  %v203_v60 = vpack.c.bf16 %v187_v52, %v187_v52  ;;  %v264_v33 = vrot.slane %v243_v11, %v1213_v7 }
  0x99   :  { %v119_v49 = vpop.xlane.xlu0 %118  ;;  %v196_v63 = vmul.f32 0.00390625, %v159_v48  ;;  %v252_v8 = vunpack.c.l.b16 %v211_v59 }
  0x9a   :  { %v188_v0 = vmul.f32 0.00390625, %v119_v49  ;;  %v244_v9 = vunpack.c.l.b16 %v203_v60 }
  0x9b   :  { %v212_v12 = vpack.c.bf16 %v196_v63, %v196_v63  ;;  %v300_v23 = vrot.slane %v252_v8, %v1213_v7 }
  0x9c   :  { %v164_v55 = vpop.xlane.xlu1 %163  ;;  %v204_v13 = vpack.c.bf16 %v188_v0, %v188_v0  ;;  %v268_v24 = vrot.slane %v244_v9, %v1213_v7 }
  0x9d   :  { %v124_v56 = vpop.xlane.xlu0 %123  ;;  %v197_v3 = vmul.f32 0.00390625, %v164_v55  ;;  %v253_v27 = vunpack.c.l.b16 %v212_v12  ;;  %v339_v40 = vsel %vm325_vm3, %v300_v23, %v296_v32  ;;  %v398_v23 = vld [vmem:[%s1365_s5 + $0x8] sm:$0xff] }
  0x9e   :  { %v189_v4 = vmul.f32 0.00390625, %v124_v56  ;;  %v245_v28 = vunpack.c.l.b16 %v204_v13  ;;  %v326_v41 = vsel %vm325_vm3, %v268_v24, %v264_v33 }
  0x9f   :  { %v213_v16 = vpack.c.bf16 %v197_v3, %v197_v3  ;;  %v304_v44 = vrot.slane %v253_v27, %v1213_v7 }
  0xa0   :  { %v169_v1 = vpop.xlane.xlu1 %168  ;;  %v205_v17 = vpack.c.bf16 %v189_v4, %v189_v4  ;;  %v272_v45 = vrot.slane %v245_v28, %v1213_v7 }
  0xa1   :  { %v129_v2 = vpop.xlane.xlu0 %128  ;;  %v198_v5 = vmul.f32 0.00390625, %v169_v1  ;;  %v254_v34 = vunpack.c.l.b16 %v213_v16  ;;  %v340_v63 = vsel %vm327_vm4, %v304_v44, %v339_v40  ;;  %v537_v40 = vld [vmem:[%s1368_s8 + $0x78] sm:$0xff] }
  0xa2   :  { %v190_v6 = vmul.f32 0.00390625, %v129_v2  ;;  %v246_v35 = vunpack.c.l.b16 %v205_v17  ;;  %v328_v0 = vsel %vm327_vm4, %v272_v45, %v326_v41  ;;  %v532_v45 = vld [vmem:[%s1368_s8 + $0x50] sm:$0xff] }
  0xa3   :  { %v214_v21 = vpack.c.bf16 %v198_v5, %v198_v5  ;;  %v308_v50 = vrot.slane %v254_v34, %v1213_v7 }
  0xa4   :  { %v174_v14 = vpop.xlane.xlu1 %173  ;;  %v206_v22 = vpack.c.bf16 %v190_v6, %v190_v6  ;;  %v276_v51 = vrot.slane %v246_v35, %v1213_v7 }
  0xa5   :  { %v134_v15 = vpop.xlane.xlu0 %133  ;;  %v199_v19 = vmul.f32 0.00390625, %v174_v14  ;;  %v255_v36 = vunpack.c.l.b16 %v214_v21  ;;  %v341_v3 = vsel %vm329_vm5, %v308_v50, %v340_v63 }
  0xa6   :  { %v191_v20 = vmul.f32 0.00390625, %v134_v15  ;;  %v247_v37 = vunpack.c.l.b16 %v206_v22  ;;  %v330_v4 = vsel %vm329_vm5, %v276_v51, %v328_v0  ;;  %v397_v22 = vld [vmem:[%s1365_s5] sm:$0xff]  ;;  %v528_v51 = vld [vmem:[%s1368_s8 + $0x30] sm:$0xff] }
  0xa7   :  { %v215_v25 = vpack.c.bf16 %v199_v19, %v199_v19  ;;  %v312_v54 = vrot.slane %v255_v36, %v1213_v7  ;;  %v413_v24 = vpack.c.bf16 %v398_v23, %v397_v22 }
  0xa8   :  { %v207_v26 = vpack.c.bf16 %v191_v20, %v191_v20  ;;  %v179_v29 = vpop.xlane.xlu1 %178  ;;  %v280_v55 = vrot.slane %v247_v37, %v1213_v7  ;;  %v399_v20 = vld [vmem:[%s1365_s5 + $0x10] sm:$0xff]  ;;  %v610_v37 = vld [vmem:[%s1364_s4] sm:$0x1] }
  0xa9   :  { %v139_v30 = vpop.xlane.xlu0 %138  ;;  %v200_v38 = vmul.f32 0.00390625, %v179_v29  ;;  %v256_v42 = vunpack.c.l.b16 %v215_v25  ;;  %v342_v8 = vsel %vm331_vm6, %v312_v54, %v341_v3  ;;  %v224_v25 = vsub.s32 0, %v1210_v57  ;;  %v526_v54 = vld [vmem:[%s1368_s8 + $0x20] sm:$0xff] }
  0xaa   :  { %v192_v39 = vmul.f32 0.00390625, %v139_v30  ;;  %v248_v43 = vunpack.c.l.b16 %v207_v26  ;;  %v332_v9 = vsel %vm331_vm6, %v280_v55, %v330_v4  ;;  %v220_v26 = vld [vmem:[%s1362_s2] sm:$0x1]  ;;  %v527_v55 = vld [vmem:[%s1368_s8 + $0x28] sm:$0xff] }
  0xab   :  { %v216_v46 = vpack.c.bf16 %v200_v38, %v200_v38  ;;  %v316_v59 = vrot.slane %v256_v42, %v1213_v7  ;;  %v225_v28 = vrot.slane %v220_v26, %v224_v25  ;;  %v612_v36 = vmul.f32 0.001, %v220_v26  ;;  %v534_v42 = vld [vmem:[%s1368_s8 + $0x60] sm:$0xff] }
  0xac   :  { %v208_v47 = vpack.c.bf16 %v192_v39, %v192_v39  ;;  %v184_v48 = vpop.xlane.xlu1 %183  ;;  %v284_v60 = vrot.slane %v248_v43, %v1213_v7  ;;  %v611_v38 = vmul.f32 0.999, %v610_v37  ;;  %v535_v43 = vld [vmem:[%s1368_s8 + $0x68] sm:$0xff] }
  0xad   :  { %v144_v49 = vpop.xlane.xlu0 %143  ;;  %v201_v52 = vmul.f32 0.00390625, %v184_v48  ;;  %v257_v56 = vunpack.c.l.b16 %v216_v46  ;;  %v343_v10 = vsel %vm333_vm7, %v316_v59, %v342_v8  ;;  %v544_v44 = vpack.c.bf16 %v535_v43, %v534_v42  ;;  %v533_v46 = vld [vmem:[%s1368_s8 + $0x58] sm:$0xff]  ;;  %v530_v48 = vld [vmem:[%s1368_s8 + $0x40] sm:$0xff] }
  0xae   :  { %v193_v53 = vmul.f32 0.00390625, %v144_v49  ;;  %v249_v58 = vunpack.c.l.b16 %v208_v47  ;;  %v334_v11 = vsel %vm333_vm7, %v284_v60, %v332_v9  ;;  %v613_v39 = vadd.f32 %v612_v36, %v611_v38  ;;  %v531_v49 = vld [vmem:[%s1368_s8 + $0x48] sm:$0xff]  ;;  %v525_v59 = vld [vmem:[%s1368_s8 + $0x18] sm:$0xff] }
  0xaf   :  { %v217_v61 = vpack.c.bf16 %v201_v52, %v201_v52  ;;  %v320_v1 = vrot.slane %v257_v56, %v1213_v7  ;;  %v543_v47 = vpack.c.bf16 %v533_v46, %v532_v45  ;;  %v542_v50 = vpack.c.bf16 %v531_v49, %v530_v48  ;;  %v529_v52 = vld [vmem:[%s1368_s8 + $0x38] sm:$0xff]  ;;  %v853_v48 = vld [vmem:[%s1366_s6] ss:$0 sm:$0xff] }
  0xb0   :  { %v209_v62 = vpack.c.bf16 %v193_v53, %v193_v53  ;;  %v288_v2 = vrot.slane %v249_v58, %v1213_v7  ;;  %615 = vst [vmem:[%s1372_s12] sm:$0x1] %v613_v39  ;;  %v541_v53 = vpack.c.bf16 %v529_v52, %v528_v51  ;;  %v540_v56 = vpack.c.bf16 %v527_v55, %v526_v54  ;;  %v524_v58 = vld [vmem:[%s1368_s8 + $0x10] sm:$0xff]  ;;  %v854_v52 = vld [vmem:[%s1367_s7] ss:$0 sm:$0xff] }
  0xb1   :  { %v258_v5 = vunpack.c.l.b16 %v217_v61  ;;  %v344_v14 = vsel %vm335_vm8, %v320_v1, %v343_v10  ;;  %v539_v60 = vpack.c.bf16 %v525_v59, %v524_v58  ;;  %v522_v61 = vld [vmem:[%s1368_s8] sm:$0xff]  ;;  %v621_v8 = vrot.slane %v613_v39, %v224_v25 }
  0xb2   :  { %v250_v6 = vunpack.c.l.b16 %v209_v62  ;;  %v336_v15 = vsel %vm335_vm8, %v288_v2, %v334_v11  ;;  %v523_v62 = vld [vmem:[%s1368_s8 + $0x8] sm:$0xff] }
  0xb3   :  { %v324_v12 = vrot.slane %v258_v5, %v1213_v7  ;;  %v538_v63 = vpack.c.bf16 %v523_v62, %v522_v61 }
  0xb4   :  { %v292_v13 = vrot.slane %v250_v6, %v1213_v7  ;;  %v400_v7 = vld [vmem:[%s1365_s5 + $0x18] sm:$0xff] }
  0xb5   :  { %v345_v16 = vsel %vm337_vm9, %v324_v12, %v344_v14  ;;  %v414_v21 = vpack.c.bf16 %v400_v7, %v399_v20 }
  0xb6   :  { %v338_v17 = vsel %vm337_vm9, %v292_v13, %v336_v15 }
  0xb7   :  { %v346_v19 = vpack.c.b16 %v345_v16, %v338_v17  ;;  %902 = vmatpush3.bf16.msra.mxu1 %v414_v21 }
  0xb8   :  { %903 = vmatprep.subr.bf16.mxu1 %v1000_v18 }
  0xb9   :  { %886 = vmatmul.mubr.msk.bf16.vlgmr.msra.gmra.mxu0 %vm347_vm10, %v346_v19 }
  0xba   :  { %925 = vmatprep.mubr.msk.bf16.mxu0 %vm1001_vm2, %v1000_v18 }
  0xbb   :  { %904 = vmatpush3.bf16.msra.mxu1 %v413_v24 }
  0xbc   :  { %929 = vmatprep.subr.bf16.mxu1 %v1000_v18 }
 0x179   :  { %v389_v27 = vpop.f32.mrf.mxu0 }
 0x17a   :  { %v390_v32 = vadd.f32 %v389_v27, %v225_v28 }
 0x17b   :  { %v887_v29 = vpop.f32.mrf.mxu0 }
 0x17d   :  { %v392_v30 = vpop.f32.mrf.mxu0 }
 0x17e   :  { %v393_v33 = vadd.f32 %v392_v30, %v225_v28 }
 0x17f   :  { %v888_v34 = vpop.f32.mrf.mxu0 }
 0x180   :  { %v396_v35 = vpack.c.bf16 %v393_v33, %v390_v32 }
 0x182   :  { %906 = vmatmul.mubr.bf16.vlgmr.msra.gmra.mxu1 %v396_v35 }
 0x183   :  { %930 = vmatpush3.bf16.msra.mxu1 %v1178_v31  ;;  %931 = vmatprep.mubr.msk.bf16.mxu1 %vm1001_vm2, %v1000_v18  ;;  %v536_v31 = vld [vmem:[%s1368_s8 + $0x70] sm:$0xff] }
 0x184   :  { %941 = vmatprep.subr.bf16.mxu1 %v1000_v18  ;;  %v545_v41 = vpack.c.bf16 %v537_v40, %v536_v31 }
 0x186   :  { %910 = vmatpush3.bf16.msra.mxu0 %v545_v41 }
 0x187   :  { %911 = vmatprep.subr.bf16.mxu0 %v1000_v18 }
 0x18a   :  { %932 = vmatmul.mubr.msk.bf16.vlgmr.msra.gmra.mxu1 %vm347_vm10, %v346_v19  ;;  %912 = vmatpush3.bf16.msra.mxu0 %v544_v44 }
 0x18b   :  { %943 = vmatprep.mubr.msk.bf16.mxu1 %vm1001_vm2, %v1000_v18  ;;  %913 = vmatprep.subr.bf16.mxu0 %v1000_v18 }
 0x18e   :  { %914 = vmatpush3.bf16.msra.mxu0 %v543_v47 }
 0x18f   :  { %915 = vmatprep.subr.bf16.mxu0 %v1000_v18 }
 0x192   :  { %916 = vmatpush3.bf16.msra.mxu0 %v542_v50 }
 0x193   :  { %917 = vmatprep.subr.bf16.mxu0 %v1000_v18 }
 0x196   :  { %918 = vmatpush3.bf16.msra.mxu0 %v541_v53 }
 0x197   :  { %919 = vmatprep.subr.bf16.mxu0 %v1000_v18 }
 0x19a   :  { %920 = vmatpush3.bf16.msra.mxu0 %v540_v56 }
 0x19b   :  { %921 = vmatprep.subr.bf16.mxu0 %v1000_v18 }
 0x19e   :  { %922 = vmatpush3.bf16.msra.mxu0 %v539_v60 }
 0x19f   :  { %923 = vmatprep.subr.bf16.mxu0 %v1000_v18 }
 0x1a2   :  { %924 = vmatpush3.bf16.msra.mxu0 %v538_v63 }
 0x1a3   :  { %935 = vmatprep.subr.bf16.mxu0 %v1000_v18 }
 0x242   :  { %v455_v0 = vpop.f32.mrf.mxu1 }
 0x243   :  { %v464_v1 = vrot.slane %v455_v0, 4 }
 0x244   :  { %v907_v2 = vpop.f32.mrf.mxu1 }
 0x245   :  { %v465_v3 = vadd.f32 %v464_v1, %v455_v0 }
 0x246   :  { %v458_v4 = vpop.f32.mrf.mxu1 }
 0x247   :  { %v466_v5 = vrot.slane %v465_v3, 2  ;;  %v499_v6 = vrot.slane %v458_v4, 4 }
 0x248   :  { %v908_v9 = vpop.f32.mrf.mxu1 }
 0x249   :  { %v467_v10 = vadd.f32 %v466_v5, %v465_v3  ;;  %v500_v11 = vadd.f32 %v499_v6, %v458_v4 }
 0x24a   :  { %v660_v12 = vpop.f32.mrf.mxu1 }
 0x24b   :  { %v468_v13 = vrot.slane %v467_v10, 1  ;;  %v501_v14 = vrot.slane %v500_v11, 2  ;;  %v661_v15 = vadd.f32 %v660_v12, %v621_v8 }
 0x24c   :  { %v933_v16 = vpop.f32.mrf.mxu1 }
 0x24d   :  { %v469_v17 = vadd.f32 %v468_v13, %v467_v10  ;;  %v502_v19 = vadd.f32 %v501_v14, %v500_v11  ;;  %v667_v20 = vmul.f32 %v661_v15, %v661_v15 }
 0x24e   :  { %v663_v7 = vpop.f32.mrf.mxu1 }
 0x24f   :  { %v471_v21 = vmul.f32 0.125, %v469_v17  ;;  %v503_v22 = vrot.slane %v502_v19, 1  ;;  %v664_v23 = vadd.f32 %v663_v7, %v621_v8  ;;  %669 = vadd.xlane.f32.xlu0 %v667_v20 }
 0x250   :  { %v934_v24 = vpop.f32.mrf.mxu1 }
 0x251   :  { %v472_v26 = vsub.f32 %v455_v0, %v471_v21  ;;  %v504_v57 = vadd.f32 %v503_v22, %v502_v19  ;;  %v668_v25 = vmul.f32 %v664_v23, %v664_v23 }
 0x253   :  { %v473_v27 = vmul.f32 %v472_v26, %v472_v26  ;;  %v505_v28 = vmul.f32 0.125, %v504_v57  ;;  %671 = vadd.xlane.f32.xlu1 %v668_v25 }
 0x255   :  { %v474_v29 = vrot.slane %v473_v27, 4  ;;  %v506_v30 = vsub.f32 %v458_v4, %v505_v28 }
 0x257   :  { %v475_v32 = vadd.f32 %v474_v29, %v473_v27  ;;  %v507_v33 = vmul.f32 %v506_v30, %v506_v30 }
 0x259   :  { %v476_v34 = vrot.slane %v475_v32, 2  ;;  %v508_v35 = vrot.slane %v507_v33, 4 }
 0x25b   :  { %v477_v36 = vadd.f32 %v476_v34, %v475_v32  ;;  %v509_v37 = vadd.f32 %v508_v35, %v507_v33 }
 0x25d   :  { %v478_v38 = vrot.slane %v477_v36, 1  ;;  %v510_v39 = vrot.slane %v509_v37, 2 }
 0x25f   :  { %v479_v31 = vadd.f32 %v478_v38, %v477_v36  ;;  %v511_v40 = vadd.f32 %v510_v39, %v509_v37 }
 0x261   :  { %v480_v41 = vmul.f32 0.125, %v479_v31  ;;  %v512_v42 = vrot.slane %v511_v40, 1 }
 0x263   :  { %v481_v43 = vadd.f32 1e-05, %v480_v41  ;;  %v513_v44 = vadd.f32 %v512_v42, %v511_v40 }
 0x265   :  { %970 = vrsqrt.f32 %v481_v43  ;;  %v514_v45 = vmul.f32 0.125, %v513_v44 }
 0x267   :  { %v515_v46 = vadd.f32 1e-05, %v514_v45 }
 0x269   :  { %972 = vrsqrt.f32 %v515_v46 }
 0x272   :  { %v971_v47 = vpop.eup %970 }
 0x273   :  { %v483_v49 = vmul.f32 %v971_v47, %v472_v26 }
 0x275   :  { %v490_v50 = vmul.f32 %v853_v48, %v483_v49 }
 0x276   :  { %v973_v51 = vpop.eup %972 }
 0x277   :  { %v517_v53 = vmul.f32 %v973_v51, %v506_v30  ;;  %v497_v54 = vadd.f32 %v854_v52, %v490_v50 }
 0x279   :  { %v518_v55 = vmul.f32 %v853_v48, %v517_v53  ;;  %v498_v58 = vmax.f32 %v497_v54, 0.0 }
 0x27b   :  { %v519_v56 = vadd.f32 %v854_v52, %v518_v55 }
 0x27d   :  { %v520_v59 = vmax.f32 %v519_v56, 0.0 }
 0x27f   :  { %v521_v60 = vpack.c.bf16 %v520_v59, %v498_v58 }
 0x281   :  { %926 = vmatmul.mubr.bf16.vlgmr.msra.gmra.mxu0 %v521_v60 }
 0x282   :  { %937 = vmatprep.mubr.msk.bf16.mxu0 %vm1001_vm2, %v1000_v18  ;;  %v855_v18 = vld [vmem:[%s1369_s9] ss:$0 sm:$0xff] }
 0x2d8   :  { %v670_v61 = vpop.xlane.xlu0 %669 }
 0x2d9   :  { %v673_v62 = vmax.f32 %v670_v61, 1e-24 }
 0x2db   :  { %974 = vrsqrt.f32 %v673_v62 }
 0x2dc   :  { %v672_v63 = vpop.xlane.xlu1 %671 }
 0x2dd   :  { %v674_v0 = vmax.f32 %v672_v63, 1e-24 }
 0x2df   :  { %976 = vrsqrt.f32 %v674_v0 }
 0x2e8   :  { %v975_v1 = vpop.eup %974 }
 0x2e9   :  { %v1345_v2 = vmul.f32 %v975_v1, %v661_v15 }
 0x2eb   :  { %v755_v3 = vpack.c.bf16 %v1345_v2, %v1345_v2 }
 0x2ec   :  { %v977_v4 = vpop.eup %976 }
 0x2ed   :  { %942 = vmatpush3.bf16.xpose.msra.mxu1 %v755_v3  ;;  %v678_v5 = vmul.f32 %v977_v4, %v664_v23 }
 0x2ef   :  { %v680_v6 = vpack.c.bf16 %v678_v5, %v678_v5 }
 0x2f1   :  { %936 = vmatpush3.bf16.xpose.msra.mxu0 %v680_v6 }
 0x341   :  { %v587_v8 = vpop.f32.mrf.mxu0 }
 0x342   :  { %v588_v9 = vadd.f32 %v855_v18, %v587_v8 }
 0x343   :  { %v927_v10 = vpop.f32.mrf.mxu0 }
 0x344   :  { %v594_v11 = vmul.f32 %v588_v9, %v588_v9 }
 0x345   :  { %v590_v12 = vpop.f32.mrf.mxu0 }
 0x346   :  { %v591_v13 = vadd.f32 %v855_v18, %v590_v12  ;;  %596 = vadd.xlane.f32.xlu0 %v594_v11 }
 0x347   :  { %v928_v14 = vpop.f32.mrf.mxu0 }
 0x348   :  { %v595_v15 = vmul.f32 %v591_v13, %v591_v13 }
 0x34a   :  { %598 = vadd.xlane.f32.xlu1 %v595_v15 }
 0x3cf   :  { %v597_v16 = vpop.xlane.xlu0 %596 }
 0x3d0   :  { %v600_v17 = vmax.f32 %v597_v16, 1e-24 }
 0x3d2   :  { %978 = vrsqrt.f32 %v600_v17 }
 0x3d3   :  { %v599_v19 = vpop.xlane.xlu1 %598 }
 0x3d4   :  { %v601_v20 = vmax.f32 %v599_v19, 1e-24 }
 0x3d6   :  { %980 = vrsqrt.f32 %v601_v20 }
 0x3df   :  { %v979_v7 = vpop.eup %978 }
 0x3e0   :  { %v604_v21 = vmul.f32 %v979_v7, %v588_v9 }
 0x3e2   :  { %v679_v22 = vpack.c.bf16 %v604_v21, %v604_v21  ;;  %v722_v46 = vmul.f32 %v678_v5, %v604_v21 }
 0x3e3   :  { %v981_v23 = vpop.eup %980 }
 0x3e4   :  { %938 = vmatmul.mubr.bf16.vlgmr.msra.gmra.mxu0 %v679_v22  ;;  %v605_v24 = vmul.f32 %v981_v23, %v591_v13 }
 0x3e6   :  { %v754_v26 = vpack.c.bf16 %v605_v24, %v605_v24  ;;  %v797_v48 = vmul.f32 %v1345_v2, %v605_v24 }
 0x3e8   :  { %944 = vmatmul.mubr.bf16.vlgmr.msra.gmra.mxu1 %v754_v26 }
 0x4a4   :  { %v715_v57 = vpop.f32.mrf.mxu0 }
 0x4a5   :  { %v721_v25 = vmul.f32 14.285714, %v715_v57 }
 0x4a6   :  { %v939_v27 = vpop.f32.mrf.mxu0 }
 0x4a7   :  { %v727_v28 = vsel %vm726_vm11, %v721_v25, -inf }
 0x4a8   :  { %v790_v29 = vpop.f32.mrf.mxu1  ;;  %728 = vmax.xlane.f32.xlu0 %v727_v28  ;;  %v718_v30 = vpop.f32.mrf.mxu0 }
 0x4a9   :  { %v796_v32 = vmul.f32 14.285714, %v790_v29 }
 0x4aa   :  { %v940_v33 = vpop.f32.mrf.mxu0  ;;  %v945_v34 = vpop.f32.mrf.mxu1 }
 0x4ab   :  { %v801_v35 = vsel %vm726_vm11, %v796_v32, -inf }
 0x4ac   :  { %802 = vmax.xlane.f32.xlu1 %v801_v35  ;;  %v793_v36 = vpop.f32.mrf.mxu1 }
 0x4ae   :  { %v946_v37 = vpop.f32.mrf.mxu1 }
 0x531   :  { %v729_v38 = vpop.xlane.xlu0 %728 }
 0x532   :  { %v730_v39 = vsub.f32 %v721_v25, %v729_v38 }
 0x534   :  { %v731_v31 = vmul.f32 1.442695, %v730_v39 }
 0x535   :  { %v803_v40 = vpop.xlane.xlu1 %802 }
 0x536   :  { %982 = vpow2.f32 %v731_v31  ;;  %v804_v41 = vsub.f32 %v796_v32, %v803_v40 }
 0x538   :  { %v805_v42 = vmul.f32 1.442695, %v804_v41 }
 0x53a   :  { %984 = vpow2.f32 %v805_v42 }
 0x543   :  { %v983_v43 = vpop.eup %982 }
 0x544   :  { %v733_v44 = vsel %vm726_vm11, %v983_v43, 0.0 }
 0x545   :  { %734 = vadd.xlane.f32.xlu0 %v733_v44 }
 0x547   :  { %v985_v45 = vpop.eup %984 }
 0x548   :  { %v807_v47 = vsel %vm726_vm11, %v985_v45, 0.0 }
 0x549   :  { %808 = vadd.xlane.f32.xlu1 %v807_v47  ;;  %723 = vadd.xlane.f32.xlu0 %v722_v46 }
 0x54d   :  { %798 = vadd.xlane.f32.xlu1 %v797_v48 }
 0x5ce   :  { %v735_v49 = vpop.xlane.xlu0 %734 }
 0x5cf   :  { %986 = vlog2.f32 %v735_v49 }
 0x5d2   :  { %v809_v50 = vpop.xlane.xlu1 %808  ;;  %v724_v52 = vpop.xlane.xlu0 %723 }
 0x5d3   :  { %988 = vlog2.f32 %v809_v50  ;;  %v725_v54 = vmul.f32 14.285714, %v724_v52 }
 0x5d6   :  { %v799_v58 = vpop.xlane.xlu1 %798 }
 0x5d7   :  { %v800_v61 = vmul.f32 14.285714, %v799_v58 }
 0x5dc   :  { %v987_v51 = vpop.eup %986 }
 0x5dd   :  { %v737_v53 = vmul.f32 0.6931472, %v987_v51 }
 0x5df   :  { %v738_v55 = vadd.f32 %v737_v53, %v729_v38 }
 0x5e0   :  { %v989_v56 = vpop.eup %988 }
 0x5e1   :  { %v811_v59 = vmul.f32 0.6931472, %v989_v56  ;;  %v739_v60 = vsub.f32 %v738_v55, %v725_v54 }
 0x5e3   :  { %v741_v62 = vsel %vm740_vm12, %v739_v60, 0.0  ;;  %v812_v63 = vadd.f32 %v811_v59, %v803_v40 }
 0x5e4   :  { %742 = vadd.xlane.f32.xlu0 %v741_v62 }
 0x5e5   :  { %v813_v0 = vsub.f32 %v812_v63, %v800_v61 }
 0x5e7   :  { %v814_v1 = vsel %vm740_vm12, %v813_v0, 0.0 }
 0x5e8   :  { %815 = vadd.xlane.f32.xlu1 %v814_v1 }
 0x66d   :  { %v743_v2 = vpop.xlane.xlu0 %742 }
 0x66e   :  { %v744_v3 = vrot.slane %v743_v2, 4 }
 0x670   :  { %v745_v4 = vadd.f32 %v744_v3, %v743_v2 }
 0x671   :  { %v816_v5 = vpop.xlane.xlu1 %815 }
 0x672   :  { %v746_v6 = vrot.slane %v745_v4, 2  ;;  %v817_v18 = vrot.slane %v816_v5, 4 }
 0x674   :  { %v818_v8 = vadd.f32 %v817_v18, %v816_v5  ;;  %v747_v9 = vadd.f32 %v746_v6, %v745_v4 }
 0x676   :  { %v819_v10 = vrot.slane %v818_v8, 2  ;;  %v748_v11 = vrot.slane %v747_v9, 1 }
 0x678   :  { %v820_v12 = vadd.f32 %v819_v10, %v818_v8  ;;  %v749_v13 = vadd.f32 %v748_v11, %v747_v9 }
 0x67a   :  { %947 = vpush %v749_v13  ;;  %v821_v14 = vrot.slane %v820_v12, 1 }
 0x67c   :  { %v822_v15 = vadd.f32 %v821_v14, %v820_v12 }
 0x67e   :  { %949 = vpush %v822_v15 }
 0x6ab   :  { %s948_s9 = spop %947 }
 0x6ac   :  { %s753_s20 = smul.f32 0.125, %s948_s9 }
 0x6af   :  { %s950_s3 = spop %949 }
 0x6b0   :  { %s826_s21 = smul.f32 0.125, %s950_s3 }
 0x6b2   :  { %s827_s22 = sadd.f32 %s826_s21, %s753_s20 }
 0x6b4   :  { %s828_s23 = smul.f32 0.14, %s827_s22 }
 0x6b6   :  { %830 = sst [smem:[#allocation2]] %s828_s23 }
 0x6b7   :  { %838 = dma.smem_to_hbm %s1002_s24, 16, %s1370_s10, [#allocation3]  }
 0x6b8   :  { %998 = dma.done.wait [#allocation3], 16  }
 0x6b9   :  { %999 = vsyncadd [#allocation3], 4294967280 }
 0x6ba   :  { %850 = sfence }
 0x6bb   :  { %851 = vsyncpa [#allocation3], 1 }

</bundles_post_ra>
